<compile_context>
chip_gen: v6e
topology: v6e:2x2x1
jax: 0.10.0
libtpu: 0.0.40
codegen_flags: <defaults>
</compile_context>

<pallas_src>
import jax
import jax.numpy as jnp
from jax.experimental import pallas as pl
from jax.experimental.pallas import tpu as pltpu

# Synthetic, small hyperparameters (mirror the module's __init__ arguments)
VOCAB_SIZE = 50
EMBEDDING_DIM = 32
N_FILTERS = 16
FILTER_SIZES = (3, 4, 5)
OUTPUT_DIM = 4
PAD_IDX = 0

MAX_FS = max(FILTER_SIZES)                    # 5 taps in the fused weight
F_TOTAL = len(FILTER_SIZES) * N_FILTERS       # 48 concatenated conv features
F_PAD = 128                                   # lane-dense fused feature width
OUT_PAD = 128                                 # lane-dense output width
TILE_B = 8                                    # batch rows per grid step


def cnn1d_kernel(emb_ref, w_ref, b_ref, fcw_ref, fcb_ref, out_ref):
    """Fused conv1d(+bias+ReLU) x3 -> masked global max-pool -> linear."""
    tb = out_ref.shape[0]                     # batch rows in this tile
    rows = emb_ref.shape[0]                   # tb * seq_len
    seq_len = rows // tb

    # One wide MXU matmul: every tap of every conv at once (bf16 in, f32 acc).
    p = jnp.dot(emb_ref[...], w_ref[...],
                preferred_element_type=jnp.float32)            # [rows, MAX_FS*F_PAD]

    # Shift-and-add the per-tap 128-lane blocks.  The shift is a sublane roll of
    # the *output* (XLU), not a re-slice of the input; wrapped rows only land in
    # positions the max-pool mask below discards (taps beyond a conv's filter
    # size have zero weight columns, so they contribute nothing anywhere).
    acc = p[:, :F_PAD]
    for k in range(1, MAX_FS):                                 # static unroll
        blk = p[:, k * F_PAD:(k + 1) * F_PAD]                  # lane-tile aligned
        acc = acc + pltpu.roll(blk, shift=rows - k, axis=0)    # row t <- row t+k

    # Single fused bias + ReLU pass over the lane-dense activation (f32 VPU).
    acc = jnp.maximum(acc + b_ref[...], 0.0)

    # Global max-pool over the valid conv positions of each sequence.
    acc3 = acc.reshape(tb, seq_len, F_PAD)
    seq_idx = jax.lax.broadcasted_iota(jnp.int32, (seq_len, F_PAD), 0)
    lane_idx = jax.lax.broadcasted_iota(jnp.int32, (seq_len, F_PAD), 1)
    valid_len = jnp.zeros((seq_len, F_PAD), jnp.int32)
    off = 0
    for fs in FILTER_SIZES:                                    # static unroll
        valid_len = jnp.where((lane_idx >= off) & (lane_idx < off + N_FILTERS),
                              seq_len - fs + 1, valid_len)
        off += N_FILTERS
    mask = jnp.broadcast_to((seq_idx < valid_len)[None], acc3.shape)
    # post-ReLU values are >= 0, so masking invalid rows to 0 is exact.
    pooled = jnp.max(jnp.where(mask, acc3, 0.0), axis=1)       # [tb, F_PAD]

    # TODO(synk): nn.Dropout is identity in eval/inference mode; not applied here.
    logits = jnp.dot(pooled, fcw_ref[...],
                     preferred_element_type=jnp.float32) + fcb_ref[...]
    out_ref[...] = logits.astype(out_ref.dtype)                # [tb, OUT_PAD]


def init_params(key):
    """Raw params (for the pure-JAX reference) + packed lane-dense kernel params."""
    ks = jax.random.split(key, 9)
    emb_tbl = jax.random.normal(ks[0], (VOCAB_SIZE, EMBEDDING_DIM), jnp.float32) * 0.1
    emb_tbl = emb_tbl.at[PAD_IDX].set(0.0)                     # padding_idx row = 0
    conv_w = [jax.random.normal(ks[1 + i], (fs, EMBEDDING_DIM, N_FILTERS),
                                jnp.float32) * 0.1
              for i, fs in enumerate(FILTER_SIZES)]            # tap-major [fs, E, F]
    conv_b = [jax.random.normal(ks[4 + i], (N_FILTERS,), jnp.float32) * 0.1
              for i in range(len(FILTER_SIZES))]
    fc_w = jax.random.normal(ks[7], (F_TOTAL, OUTPUT_DIM), jnp.float32) * 0.1
    fc_b = jax.random.normal(ks[8], (OUTPUT_DIM,), jnp.float32) * 0.1

    # Pack: one lane-dense weight with every (tap, conv) as a 128-lane block;
    # taps past a conv's filter size stay zero.
    w_stacked = jnp.zeros((EMBEDDING_DIM, MAX_FS * F_PAD), jnp.float32)
    b_fused = jnp.zeros((1, F_PAD), jnp.float32)
    for i, fs in enumerate(FILTER_SIZES):
        col = i * N_FILTERS
        b_fused = b_fused.at[0, col:col + N_FILTERS].set(conv_b[i])
        for k in range(fs):
            w_stacked = w_stacked.at[
                :, k * F_PAD + col:k * F_PAD + col + N_FILTERS].set(conv_w[i][k])
    fc_w_pad = jnp.zeros((F_PAD, OUT_PAD), jnp.float32)
    fc_w_pad = fc_w_pad.at[:F_TOTAL, :OUTPUT_DIM].set(fc_w)    # padded rows/cols = 0
    fc_b_pad = jnp.zeros((1, OUT_PAD), jnp.float32).at[0, :OUTPUT_DIM].set(fc_b)

    return dict(
        # raw (PyTorch-equivalent) params
        embedding=emb_tbl, conv_w=conv_w, conv_b=conv_b, fc_w=fc_w, fc_b=fc_b,
        # packed kernel params (bf16 MXU operand for the fused conv matmul)
        w_stacked=w_stacked.astype(jnp.bfloat16),
        b_fused=b_fused, fc_w_pad=fc_w_pad, fc_b_pad=fc_b_pad)


def cnn1d_forward(params, text, text_len):
    """text: [seq_len, batch] int32 (PyTorch convention). text_len accepted for
    signature parity but unused, exactly as in the reference module."""
    del text_len
    text_bt = text.T                                           # permute(1, 0) -> [B, L]
    batch, seq_len = text_bt.shape
    b_pad = ((batch + TILE_B - 1) // TILE_B) * TILE_B
    if b_pad != batch:                                         # pad rows -> PAD tokens
        text_bt = jnp.pad(text_bt, ((0, b_pad - batch), (0, 0)),
                          constant_values=PAD_IDX)

    # Embedding gather (glue, outside the kernel); flatten to [B*L, E] and cast
    # to bf16 so both HBM traffic and the MXU operand are half width.
    # TODO(synk): the gather could be fused in-kernel via scalar-prefetched token
    # ids + a VMEM-resident table, skipping the HBM round-trip of the activation.
    emb = jnp.take(params['embedding'], text_bt, axis=0)       # [b_pad, L, E] f32
    emb = emb.reshape(b_pad * seq_len, EMBEDDING_DIM).astype(jnp.bfloat16)

    grid = (b_pad // TILE_B,)
    out = pl.pallas_call(
        cnn1d_kernel,
        out_shape=jax.ShapeDtypeStruct((b_pad, OUT_PAD), jnp.float32),
        grid_spec=pltpu.PrefetchScalarGridSpec(
            num_scalar_prefetch=0,
            grid=grid,
            in_specs=[
                # batch-tiled activation: auto double-buffered HBM->VMEM pipeline
                pl.BlockSpec((TILE_B * seq_len, EMBEDDING_DIM), lambda b: (b, 0)),
                # weights / biases stay VMEM-resident across the grid
                pl.BlockSpec((EMBEDDING_DIM, MAX_FS * F_PAD), lambda b: (0, 0)),
                pl.BlockSpec((1, F_PAD), lambda b: (0, 0)),
                pl.BlockSpec((F_PAD, OUT_PAD), lambda b: (0, 0)),
                pl.BlockSpec((1, OUT_PAD), lambda b: (0, 0)),
            ],
            out_specs=pl.BlockSpec((TILE_B, OUT_PAD), lambda b: (b, 0)),
        ),
        compiler_params=pltpu.CompilerParams(
            dimension_semantics=("parallel",)),  # v7x: shard batch over both TCs
    )(emb, params['w_stacked'], params['b_fused'],
      params['fc_w_pad'], params['fc_b_pad'])

    return out[:batch, :OUTPUT_DIM]


def cnn1d_reference(params, text):
    """Pure-JAX f32 mirror of the PyTorch forward (eval mode)."""
    emb = jnp.take(params['embedding'], text.T, axis=0)        # [B, L, E]
    seq_len = emb.shape[1]
    pooled = []
    for i, fs in enumerate(FILTER_SIZES):
        l_out = seq_len - fs + 1
        acc = jnp.zeros((emb.shape[0], l_out, N_FILTERS), jnp.float32)
        for k in range(fs):
            acc = acc + jnp.einsum('ble,ef->blf', emb[:, k:k + l_out, :],
                                   params['conv_w'][i][k])
        acc = jnp.maximum(acc + params['conv_b'][i], 0.0)
        pooled.append(jnp.max(acc, axis=1))
    cat = jnp.concatenate(pooled, axis=1)
    return cat @ params['fc_w'] + params['fc_b']


if __name__ == "__main__":
    key = jax.random.PRNGKey(0)
    pkey, tkey = jax.random.split(key)
    params = init_params(pkey)

    SEQ_LEN, BATCH = 16, 2
    text = jax.random.randint(tkey, (SEQ_LEN, BATCH), 0, VOCAB_SIZE, dtype=jnp.int32)
    text_len = jnp.full((BATCH,), SEQ_LEN, dtype=jnp.int32)

    logits = cnn1d_forward(params, text, text_len)
    jax.block_until_ready(logits)
    assert logits.shape == (BATCH, OUTPUT_DIM) and logits.dtype == jnp.float32

    # Numerical parity with the PyTorch-equivalent reference (bf16 matmul operands
    # with f32 accumulation -> loose tolerance).
    ref = cnn1d_reference(params, text)
    assert jnp.allclose(logits, ref, atol=5e-2, rtol=5e-2), (logits, ref)
    print("KERNEL_OK")
</pallas_src>

<mosaic_0001>
module attributes {stable_mosaic.version = 11 : i64} {
  func.func @cnn1d_kernel(%arg0: i32, %arg1: memref<128x32xbf16, #tpu.memory_space<vmem>>, %arg2: memref<32x640xbf16, #tpu.memory_space<vmem>>, %arg3: memref<1x128xf32, #tpu.memory_space<vmem>>, %arg4: memref<128x128xf32, #tpu.memory_space<vmem>>, %arg5: memref<1x128xf32, #tpu.memory_space<vmem>>, %arg6: memref<8x128xf32, #tpu.memory_space<vmem>>) attributes {dimension_semantics = [#tpu.dimension_semantics<parallel>], iteration_bounds = array<i64: 1>, scalar_prefetch = 0 : i64, scratch_operands = 0 : i64, tpu.core_type = #tpu.core_type<tc>, window_params = [{transform_indices = @transform_0, window_bounds = array<i64: 128, 32>}, {pipeline_mode = #tpu.pipeline_mode<synchronous>, transform_indices = @transform_1, window_bounds = array<i64: 32, 640>}, {pipeline_mode = #tpu.pipeline_mode<synchronous>, transform_indices = @transform_2, window_bounds = array<i64: 1, 128>}, {pipeline_mode = #tpu.pipeline_mode<synchronous>, transform_indices = @transform_3, window_bounds = array<i64: 128, 128>}, {pipeline_mode = #tpu.pipeline_mode<synchronous>, transform_indices = @transform_4, window_bounds = array<i64: 1, 128>}, {transform_indices = @transform_5, window_bounds = array<i64: 8, 128>}]} {
    %c0 = arith.constant 0 : index
    %c0_0 = arith.constant 0 : index
    %0 = vector.load %arg1[%c0, %c0_0] : memref<128x32xbf16, #tpu.memory_space<vmem>>, vector<128x32xbf16>
    %c0_1 = arith.constant 0 : index
    %c0_2 = arith.constant 0 : index
    %1 = vector.load %arg2[%c0_1, %c0_2] : memref<32x640xbf16, #tpu.memory_space<vmem>>, vector<32x640xbf16>
    %cst = arith.constant dense<0.000000e+00> : vector<128x640xf32>
    %2 = tpu.matmul %0, %1, %cst {dimension_numbers = #tpu.dot_dimension_numbers<[1], [0], [0], [1], [0, 0, 1, 1], [], []>} : vector<128x32xbf16>, vector<32x640xbf16>, vector<128x640xf32> -> vector<128x640xf32>
    %3 = vector.extract_strided_slice %2 {offsets = [0, 0], sizes = [128, 128], strides = [1, 1]} : vector<128x640xf32> to vector<128x128xf32>
    %4 = vector.extract_strided_slice %2 {offsets = [0, 128], sizes = [128, 128], strides = [1, 1]} : vector<128x640xf32> to vector<128x128xf32>
    %c127_i32 = arith.constant 127 : i32
    %5 = tpu.dynamic_rotate %4 by %c127_i32 dim 0 : vector<128x128xf32>, i32 -> vector<128x128xf32>
    %6 = arith.addf %3, %5 : vector<128x128xf32>
    %7 = vector.extract_strided_slice %2 {offsets = [0, 256], sizes = [128, 128], strides = [1, 1]} : vector<128x640xf32> to vector<128x128xf32>
    %c126_i32 = arith.constant 126 : i32
    %8 = tpu.dynamic_rotate %7 by %c126_i32 dim 0 : vector<128x128xf32>, i32 -> vector<128x128xf32>
    %9 = arith.addf %6, %8 : vector<128x128xf32>
    %10 = vector.extract_strided_slice %2 {offsets = [0, 384], sizes = [128, 128], strides = [1, 1]} : vector<128x640xf32> to vector<128x128xf32>
    %c125_i32 = arith.constant 125 : i32
    %11 = tpu.dynamic_rotate %10 by %c125_i32 dim 0 : vector<128x128xf32>, i32 -> vector<128x128xf32>
    %12 = arith.addf %9, %11 : vector<128x128xf32>
    %13 = vector.extract_strided_slice %2 {offsets = [0, 512], sizes = [128, 128], strides = [1, 1]} : vector<128x640xf32> to vector<128x128xf32>
    %c124_i32 = arith.constant 124 : i32
    %14 = tpu.dynamic_rotate %13 by %c124_i32 dim 0 : vector<128x128xf32>, i32 -> vector<128x128xf32>
    %15 = arith.addf %12, %14 : vector<128x128xf32>
    %c0_3 = arith.constant 0 : index
    %c0_4 = arith.constant 0 : index
    %16 = vector.load %arg3[%c0_3, %c0_4] : memref<1x128xf32, #tpu.memory_space<vmem>>, vector<1x128xf32>
    %17 = vector.broadcast %16 : vector<1x128xf32> to vector<128x128xf32>
    %18 = arith.addf %15, %17 : vector<128x128xf32>
    %cst_5 = arith.constant 0.000000e+00 : f32
    %19 = vector.broadcast %cst_5 : f32 to vector<128x128xf32>
    %20 = arith.maximumf %18, %19 : vector<128x128xf32>
    %21 = vector.shape_cast %20 : vector<128x128xf32> to vector<8x16x128xf32>
    %22 = tpu.iota {dimensions = array<i32: 0>} : vector<16x128xi32>
    %23 = tpu.iota {dimensions = array<i32: 1>} : vector<16x128xi32>
    %c0_i32 = arith.constant 0 : i32
    %24 = vector.broadcast %c0_i32 : i32 to vector<16x128xi32>
    %c0_i32_6 = arith.constant 0 : i32
    %25 = vector.broadcast %c0_i32_6 : i32 to vector<16x128xi32>
    %26 = arith.cmpi sge, %23, %25 : vector<16x128xi32>
    %c16_i32 = arith.constant 16 : i32
    %27 = vector.broadcast %c16_i32 : i32 to vector<16x128xi32>
    %28 = arith.cmpi slt, %23, %27 : vector<16x128xi32>
    %29 = arith.andi %26, %28 : vector<16x128xi1>
    %c14_i32 = arith.constant 14 : i32
    %30 = vector.broadcast %c14_i32 : i32 to vector<16x128xi32>
    %31 = arith.select %29, %30, %24 : vector<16x128xi1>, vector<16x128xi32>
    %c16_i32_7 = arith.constant 16 : i32
    %32 = vector.broadcast %c16_i32_7 : i32 to vector<16x128xi32>
    %33 = arith.cmpi sge, %23, %32 : vector<16x128xi32>
    %c32_i32 = arith.constant 32 : i32
    %34 = vector.broadcast %c32_i32 : i32 to vector<16x128xi32>
    %35 = arith.cmpi slt, %23, %34 : vector<16x128xi32>
    %36 = arith.andi %33, %35 : vector<16x128xi1>
    %c13_i32 = arith.constant 13 : i32
    %37 = vector.broadcast %c13_i32 : i32 to vector<16x128xi32>
    %38 = arith.select %36, %37, %31 : vector<16x128xi1>, vector<16x128xi32>
    %c32_i32_8 = arith.constant 32 : i32
    %39 = vector.broadcast %c32_i32_8 : i32 to vector<16x128xi32>
    %40 = arith.cmpi sge, %23, %39 : vector<16x128xi32>
    %c48_i32 = arith.constant 48 : i32
    %41 = vector.broadcast %c48_i32 : i32 to vector<16x128xi32>
    %42 = arith.cmpi slt, %23, %41 : vector<16x128xi32>
    %43 = arith.andi %40, %42 : vector<16x128xi1>
    %c12_i32 = arith.constant 12 : i32
    %44 = vector.broadcast %c12_i32 : i32 to vector<16x128xi32>
    %45 = arith.select %43, %44, %38 : vector<16x128xi1>, vector<16x128xi32>
    %46 = arith.cmpi slt, %22, %45 : vector<16x128xi32>
    %47 = vector.shape_cast %46 : vector<16x128xi1> to vector<1x16x128xi1>
    %48 = vector.shape_cast %47 : vector<1x16x128xi1> to vector<1x16x128xi1>
    %49 = vector.broadcast %48 : vector<1x16x128xi1> to vector<8x16x128xi1>
    %cst_9 = arith.constant 0.000000e+00 : f32
    %50 = vector.broadcast %cst_9 : f32 to vector<8x16x128xf32>
    %51 = arith.select %49, %21, %50 : vector<8x16x128xi1>, vector<8x16x128xf32>
    %cst_10 = arith.constant dense<0xFF800000> : vector<8x128xf32>
    %52 = vector.multi_reduction <maximumf>, %51, %cst_10 [1] : vector<8x16x128xf32> to vector<8x128xf32>
    %c0_11 = arith.constant 0 : index
    %c0_12 = arith.constant 0 : index
    %53 = vector.load %arg4[%c0_11, %c0_12] : memref<128x128xf32, #tpu.memory_space<vmem>>, vector<128x128xf32>
    %cst_13 = arith.constant dense<0.000000e+00> : vector<8x128xf32>
    %54 = tpu.matmul %52, %53, %cst_13 {dimension_numbers = #tpu.dot_dimension_numbers<[1], [0], [0], [1], [0, 0, 1, 1], [], []>} : vector<8x128xf32>, vector<128x128xf32>, vector<8x128xf32> -> vector<8x128xf32>
    %c0_14 = arith.constant 0 : index
    %c0_15 = arith.constant 0 : index
    %55 = vector.load %arg5[%c0_14, %c0_15] : memref<1x128xf32, #tpu.memory_space<vmem>>, vector<1x128xf32>
    %56 = vector.broadcast %55 : vector<1x128xf32> to vector<8x128xf32>
    %57 = arith.addf %54, %56 : vector<8x128xf32>
    %c0_16 = arith.constant 0 : index
    %c0_17 = arith.constant 0 : index
    %58 = vector.load %arg6[%c0_16, %c0_17] : memref<8x128xf32, #tpu.memory_space<vmem>>, vector<8x128xf32>
    tpu.vector_store %arg6[%c0_16, %c0_17], %57 {strides = array<i32>} : memref<8x128xf32, #tpu.memory_space<vmem>>, vector<8x128xf32>,
    return
  }
  func.func @transform_0(%arg0: i32) -> (i32, i32) {
    %c0_i32 = arith.constant 0 : i32
    %c0_i32_0 = arith.constant 0 : i32
    return %arg0, %c0_i32 : i32, i32
  }
  func.func @transform_1(%arg0: i32) -> (i32, i32) {
    %c0_i32 = arith.constant 0 : i32
    %c0_i32_0 = arith.constant 0 : i32
    %c0_i32_1 = arith.constant 0 : i32
    return %c0_i32, %c0_i32_0 : i32, i32
  }
  func.func @transform_2(%arg0: i32) -> (i32, i32) {
    %c0_i32 = arith.constant 0 : i32
    %c0_i32_0 = arith.constant 0 : i32
    %c0_i32_1 = arith.constant 0 : i32
    return %c0_i32, %c0_i32_0 : i32, i32
  }
  func.func @transform_3(%arg0: i32) -> (i32, i32) {
    %c0_i32 = arith.constant 0 : i32
    %c0_i32_0 = arith.constant 0 : i32
    %c0_i32_1 = arith.constant 0 : i32
    return %c0_i32, %c0_i32_0 : i32, i32
  }
  func.func @transform_4(%arg0: i32) -> (i32, i32) {
    %c0_i32 = arith.constant 0 : i32
    %c0_i32_0 = arith.constant 0 : i32
    %c0_i32_1 = arith.constant 0 : i32
    return %c0_i32, %c0_i32_0 : i32, i32
  }
  func.func @transform_5(%arg0: i32) -> (i32, i32) {
    %c0_i32 = arith.constant 0 : i32
    %c0_i32_0 = arith.constant 0 : i32
    return %arg0, %c0_i32 : i32, i32
  }
}

</mosaic_0001>

<bundles_post_ra>
// kernel: tpu_custom_call.1
= control target key start
LH: loop header
LB: loop body
LE: loop exit
PB: predicated region body
PF: predicated region fallthrough
CT: control target
= control target key end

     0   :  { %10 = vsyncpa [#allocation3], 0  ;;  %s1743_s0 = inlined_call_operand.vmem [shape: bf16[128,32], index: 0, kind: input, shape index: {}]   ;;  %s1744_s1 = inlined_call_operand.vmem [shape: bf16[32,640], index: 1, kind: input, shape index: {}]   ;;  %s1745_s2 = inlined_call_operand.vmem [shape: f32[1,128], index: 2, kind: input, shape index: {}]   ;;  %s1746_s3 = inlined_call_operand.hbm [shape: f32[128,128], index: 3, kind: input, shape index: {}]   ;;  %s1747_s4 = inlined_call_operand.vmem [shape: f32[1,128], index: 4, kind: input, shape index: {}]   ;;  %s1748_s5 = inlined_call_operand.hbm [shape: f32[8,128], index: 5, kind: output, shape index: {}]  }
   0x1   :  { %11 = vsyncpa [#allocation4], 0  ;;  %s1169_s18 = smov [#allocation2]  }
   0x2   :  { %s23_s19 = sshll.u32 %s1169_s18, 4  ;;  %s24_s19 = int_to_ptr.vmem [resolvable:$true] %s23_s19 }
   0x3   :  { %s1133_s20 = scalar_lea.vmem %s24_s19, 2048  ;;  %p1138_p1 = scmp.lt.s32.totalorder %s24_s19, %s24_s19 }
   0x4   :  { %p1134_p0 = scmp.ne.s32.totalorder %s24_s19, %s1133_s20  ;;  %p1139_p2 = scmp.lt.s32.totalorder %s1133_s20, %s1133_s20 }
   0x6   :  { %p1140_p3 = por %p1139_p2, %p1138_p1 }
   0x8   :  { %p1141_p4 = pnand %p1140_p3, %p1134_p0 }
   0xa   :  { %1144 = shalt.err (!%p1141_p4)
}
   0xb   :  { %s1170_s21 = smov 128   ;;  %s1171_s22 = smov 8  }
   0xc   :  { %29 = dma.hbm_to_vmem [thread:$0]  %s1746_s3, 2048, %s24_s19, [#allocation3], %s1170_s21, %s1170_s21, %s1171_s22  }
   0xd   :  { %1165 = dma.done.wait [#allocation3], 2048  }
   0xe   :  { %1166 = vsyncadd [#allocation3], 4294965248  ;;  %v1172_v0 = vmov 0   ;;  %v1103_v1 = vld [vmem:[%s1744_s1 + $0x2c] ss:$20 sps:$4 sm:$0xff]   ;;  %v1110_v6 = vld [vmem:[%s1743_s0 + $0x38] sm:$0xff]   ;;  %v520_v36 = vlaneseq }
   0xf   :  { %213 = vmatprep.mubr.bf16.mxu0 %v1172_v0  ;;  %283 = vmatprep.mubr.bf16.mxu1 %v1172_v0  ;;  %v1105_v2 = vld [vmem:[%s1744_s1 + $0x28] ss:$20 sps:$4 sm:$0xff]   ;;  %v1106_v3 = vld [vmem:[%s1744_s1 + $0x4] ss:$20 sps:$4 sm:$0xff]   ;;  %v1108_v4 = vld [vmem:[%s1744_s1] ss:$20 sps:$4 sm:$0xff]  }
  0x10   :  { %193 = vmatprep.subr.bf16.mxu0 %v1103_v1  ;;  %1092 = vmatprep.subr.bf16.mxu1 %v1103_v1  ;;  %v1109_v5 = vld [vmem:[%s1743_s0] sm:$0xff]   ;;  %v1113_v7 = vld [vmem:[%s1744_s1 + $0x34] ss:$20 sps:$4 sm:$0xff]   ;;  %v1114_v8 = vld [vmem:[%s1744_s1 + $0x38] ss:$20 sps:$4 sm:$0xff]   ;;  %vm156_vm0 = vcmask 261120  }
  0x11   :  { %194 = vmatpush1.bf16.msra.mxu0 %v1105_v2  ;;  %1094 = vmatpush1.bf16.msra.mxu1 %v1105_v2  ;;  %v1111_v9 = vld [vmem:[%s1744_s1 + $0x30] ss:$20 sps:$4 sm:$0xff]   ;;  %v1117_v10 = vld [vmem:[%s1744_s1 + $0xc] ss:$20 sps:$4 sm:$0xff]   ;;  %v1115_v11 = vld [vmem:[%s1744_s1 + $0x8] ss:$20 sps:$4 sm:$0xff]  }
  0x12   :  { %195 = vmatprep.subr.bf16.mxu0 %v1106_v3  ;;  %1093 = vmatprep.subr.bf16.mxu1 %v1106_v3  ;;  %v1121_v12 = vld [vmem:[%s1744_s1 + $0x10] ss:$20 sps:$4 sm:$0xff]   ;;  %v1118_v13 = vld [vmem:[%s1743_s0 + $0x8] sm:$0xff]   ;;  %v1120_v15 = vld [vmem:[%s1743_s0 + $0x18] sm:$0xff]   ;;  %v1173_v19 = vmov 0.0   ;;  %vm1174_vm1 = vmmov 0  }
  0x13   :  { %v1119_v14 = vld [vmem:[%s1743_s0 + $0x10] sm:$0xff]   ;;  %v1122_v16 = vld [vmem:[%s1743_s0 + $0x20] sm:$0xff]   ;;  %v1123_v17 = vld [vmem:[%s1743_s0 + $0x28] sm:$0xff]   ;;  %v1307_v41 = vshrl.u32 %v520_v36, 7  ;;  %vm865_vm15 = vcmask 1041409   ;;  %s1175_s10 = smov [#allocation5]  }
  0x14   :  { %v1124_v18 = vld [vmem:[%s1743_s0 + $0x30] sm:$0xff]   ;;  %v849_v20 = vld [vmem:[#allocation2 + $0x78] sm:$0xff]  ;;  %v847_v22 = vld [vmem:[#allocation2 + $0x68] sm:$0xff]  ;;  %s957_s11 = sshll.u32 %s1175_s10, 4  ;;  %s958_s11 = int_to_ptr.vmem [resolvable:$true] %s957_s11 }
  0x15   :  { %196 = vmatpush1.bf16.msra.mxu0 %v1108_v4  ;;  %1095 = vmatpush1.bf16.msra.mxu1 %v1108_v4  ;;  %v848_v21 = vld [vmem:[#allocation2 + $0x70] sm:$0xff]  ;;  %v846_v23 = vld [vmem:[#allocation2 + $0x60] sm:$0xff]  ;;  %v845_v24 = vld [vmem:[#allocation2 + $0x58] sm:$0xff]  ;;  %vm522_vm2 = vcmp.lt.s32.totalorder %v1307_v41, 7  ;;  %vm571_vm6 = vcmp.lt.s32.totalorder %v1307_v41, 6  ;;  %vm620_vm10 = vcmp.lt.s32.totalorder %v1307_v41, 5  ;;  %p1150_p6 = scmp.lt.s32.totalorder %s958_s11, %s958_s11 }
  0x16   :  { %306 = vmatprep.subr.bf16.mxu1 %v1113_v7  ;;  %1037 = vmatprep.subr.bf16.mxu0 %v1114_v8  ;;  %v844_v25 = vld [vmem:[#allocation2 + $0x50] sm:$0xff]  ;;  %v843_v26 = vld [vmem:[#allocation2 + $0x48] sm:$0xff]  ;;  %v842_v27 = vld [vmem:[#allocation2 + $0x40] sm:$0xff]  ;;  %vm669_vm12 = vcmp.lt.s32.totalorder %v1307_v41, 4  ;;  %s1145_s12 = scalar_lea.vmem %s958_s11, 128 }
  0x17   :  { %v841_v28 = vld [vmem:[#allocation2 + $0x38] sm:$0xff]  ;;  %v840_v29 = vld [vmem:[#allocation2 + $0x30] sm:$0xff]  ;;  %v839_v30 = vld [vmem:[#allocation2 + $0x28] sm:$0xff]  ;;  %p1146_p5 = scmp.ne.s32.totalorder %s958_s11, %s1145_s12  ;;  %p1151_p7 = scmp.lt.s32.totalorder %s1145_s12, %s1145_s12 }
  0x18   :  { %984 = vmatmul.mubr.msk.bf16.vlgmr.msra.gmra.mxu0 %vm156_vm0, %v1109_v5  ;;  %991 = vmatmul.mubr.msk.bf16.vlgmr.msra.gmra.mxu1 %vm156_vm0, %v1110_v6  ;;  %v838_v31 = vld [vmem:[#allocation2 + $0x20] sm:$0xff]  ;;  %v837_v32 = vld [vmem:[#allocation2 + $0x18] sm:$0xff]  ;;  %v836_v33 = vld [vmem:[#allocation2 + $0x10] sm:$0xff] }
  0x19   :  { %307 = vmatpush1.bf16.msra.mxu1 %v1111_v9  ;;  %1038 = vmatpush3.bf16.msra.mxu0 %v1114_v8  ;;  %v835_v34 = vld [vmem:[#allocation2 + $0x8] sm:$0xff]  ;;  %v834_v35 = vld [vmem:[#allocation2] sm:$0xff]  ;;  %p1152_p8 = por %p1151_p7, %p1150_p6 }
  0x1a   :  { %308 = vmatprep.subr.bf16.mxu1 %v1117_v10  ;;  %223 = vmatprep.mubr.bf16.mxu0 %v1172_v0 }
  0x1b   :  { %326 = vmatprep.mubr.bf16.mxu1 %v1172_v0  ;;  %1039 = vmatprep.subr.bf16.mxu0 %v1121_v12  ;;  %p1153_p9 = pnand %p1152_p8, %p1146_p5 }
  0x1d   :  { %309 = vmatpush1.bf16.msra.mxu1 %v1115_v11  ;;  %1040 = vmatpush3.bf16.msra.mxu0 %v1121_v12 }
  0x1e   :  { %1057 = vmatprep.subr.mxu1 %v1173_v19 }
  0x20   :  { %985 = vmatmul.mubr.msk.bf16.gmra.mxu0 %vm156_vm0, %v1118_v13  ;;  %992 = vmatmul.mubr.msk.bf16.vlgmr.msra.gmra.mxu1 %vm156_vm0, %v1109_v5 }
  0x21   :  { %233 = vmatprep.mubr.bf16.mxu0 %v1172_v0  ;;  %336 = vmatprep.mubr.bf16.mxu1 %v1172_v0 }
  0x22   :  { %1058 = vmatpush3.msra.mxu1 %v849_v20 }
  0x23   :  { %1059 = vmatprep.subr.mxu1 %v1173_v19 }
  0x24   :  { %1060 = vmatpush3.msra.mxu1 %v848_v21 }
  0x25   :  { %1061 = vmatprep.subr.mxu1 %v1173_v19 }
  0x26   :  { %1062 = vmatpush3.msra.mxu1 %v847_v22 }
  0x27   :  { %1063 = vmatprep.subr.mxu1 %v1173_v19 }
  0x28   :  { %986 = vmatmul.mubr.msk.bf16.gmra.mxu0 %vm156_vm0, %v1119_v14  ;;  %993 = vmatmul.mubr.msk.bf16.gmra.mxu1 %vm156_vm0, %v1118_v13 }
  0x29   :  { %243 = vmatprep.mubr.bf16.mxu0 %v1172_v0  ;;  %346 = vmatprep.mubr.bf16.mxu1 %v1172_v0 }
  0x2a   :  { %1064 = vmatpush3.msra.mxu1 %v846_v23 }
  0x2b   :  { %1065 = vmatprep.subr.mxu1 %v1173_v19 }
  0x2c   :  { %1066 = vmatpush3.msra.mxu1 %v845_v24 }
  0x2d   :  { %1067 = vmatprep.subr.mxu1 %v1173_v19 }
  0x2e   :  { %1068 = vmatpush3.msra.mxu1 %v844_v25 }
  0x2f   :  { %1069 = vmatprep.subr.mxu1 %v1173_v19 }
  0x30   :  { %987 = vmatmul.mubr.msk.bf16.gmra.mxu0 %vm156_vm0, %v1120_v15  ;;  %994 = vmatmul.mubr.msk.bf16.gmra.mxu1 %vm156_vm0, %v1119_v14 }
  0x31   :  { %253 = vmatprep.mubr.bf16.mxu0 %v1172_v0  ;;  %356 = vmatprep.mubr.bf16.mxu1 %v1172_v0 }
  0x32   :  { %1070 = vmatpush3.msra.mxu1 %v843_v26 }
  0x33   :  { %1071 = vmatprep.subr.mxu1 %v1173_v19 }
  0x34   :  { %1072 = vmatpush3.msra.mxu1 %v842_v27 }
  0x35   :  { %1073 = vmatprep.subr.mxu1 %v1173_v19 }
  0x36   :  { %1074 = vmatpush3.msra.mxu1 %v841_v28 }
  0x37   :  { %1075 = vmatprep.subr.mxu1 %v1173_v19 }
  0x38   :  { %988 = vmatmul.mubr.msk.bf16.gmra.mxu0 %vm156_vm0, %v1122_v16  ;;  %995 = vmatmul.mubr.msk.bf16.gmra.mxu1 %vm156_vm0, %v1120_v15 }
  0x39   :  { %263 = vmatprep.mubr.bf16.mxu0 %v1172_v0  ;;  %366 = vmatprep.mubr.bf16.mxu1 %v1172_v0 }
  0x3a   :  { %1076 = vmatpush3.msra.mxu1 %v840_v29 }
  0x3b   :  { %1077 = vmatprep.subr.mxu1 %v1173_v19 }
  0x3c   :  { %1078 = vmatpush3.msra.mxu1 %v839_v30 }
  0x3d   :  { %1079 = vmatprep.subr.mxu1 %v1173_v19 }
  0x3e   :  { %1080 = vmatpush3.msra.mxu1 %v838_v31 }
  0x3f   :  { %1081 = vmatprep.subr.mxu1 %v1173_v19 }
  0x40   :  { %989 = vmatmul.mubr.msk.bf16.gmra.mxu0 %vm156_vm0, %v1123_v17  ;;  %996 = vmatmul.mubr.msk.bf16.gmra.mxu1 %vm156_vm0, %v1122_v16 }
  0x41   :  { %273 = vmatprep.mubr.bf16.mxu0 %v1172_v0  ;;  %376 = vmatprep.mubr.bf16.mxu1 %v1172_v0 }
  0x42   :  { %1082 = vmatpush3.msra.mxu1 %v837_v32 }
  0x43   :  { %1083 = vmatprep.subr.mxu1 %v1173_v19 }
  0x44   :  { %1084 = vmatpush3.msra.mxu1 %v836_v33 }
  0x45   :  { %1085 = vmatprep.subr.mxu1 %v1173_v19 }
  0x46   :  { %1086 = vmatpush3.msra.mxu1 %v835_v34 }
  0x47   :  { %1087 = vmatprep.subr.mxu1 %v1173_v19 }
  0x48   :  { %990 = vmatmul.mubr.msk.bf16.gmra.mxu0 %vm156_vm0, %v1124_v18  ;;  %997 = vmatmul.mubr.msk.bf16.gmra.mxu1 %vm156_vm0, %v1123_v17 }
  0x49   :  { %386 = vmatprep.mubr.bf16.mxu1 %v1172_v0  ;;  %1041 = vmatprep.mubr.msk.bf16.mxu0 %vm156_vm0, %v1109_v5 }
  0x4a   :  { %1088 = vmatpush3.msra.mxu1 %v834_v35 }
  0x50   :  { %998 = vmatmul.mubr.msk.bf16.gmra.mxu1 %vm156_vm0, %v1124_v18  ;;  %1042 = vmatmul.mubr.msk.bf16.vlgmr.msra.gmra.mxu0 %vm156_vm0, %v1118_v13 }
  0x51   :  { %396 = vmatprep.mubr.bf16.mxu1 %v1172_v0  ;;  %1045 = vmatprep.mubr.msk.bf16.mxu0 %vm156_vm0, %v1119_v14 }
  0x58   :  { %999 = vmatmul.mubr.msk.bf16.gmra.mxu1 %vm156_vm0, %v1110_v6  ;;  %1046 = vmatmul.mubr.msk.bf16.gmra.mxu0 %vm156_vm0, %v1120_v15 }
  0x59   :  { %1049 = vmatprep.mubr.msk.bf16.mxu0 %vm156_vm0, %v1122_v16  ;;  %1089 = vmatprep.mubr.msk.f32.mxu1 %vm1174_vm1, %v1173_v19  ;;  %vm869_vm1 = vcmask 1043459  }
  0x60   :  { %1050 = vmatmul.mubr.msk.bf16.gmra.mxu0 %vm156_vm0, %v1123_v17 }
  0x61   :  { %1053 = vmatprep.mubr.msk.bf16.mxu0 %vm156_vm0, %v1124_v18  ;;  %v743_v18 = vand.u32 127, %v520_v36 }
  0x63   :  { %vm745_vm3 = vcmp.lt.s32.totalorder %v743_v18, 16  ;;  %vm748_vm4 = vcmp.ge.s32.totalorder %v743_v18, 16  ;;  %vm749_vm5 = vcmp.lt.s32.totalorder %v743_v18, 32  ;;  %vm752_vm8 = vcmp.ge.s32.totalorder %v743_v18, 32 }
  0x64   :  { %v747_v30 = vsel %vm745_vm3, 14, %v1172_v0  ;;  %vm1383_vm7 = vmand %vm748_vm4, %vm749_vm5  ;;  %vm753_vm9 = vcmp.lt.s32.totalorder %v743_v18, 48  ;;  %vm873_vm3 = vcmask 1045509   ;;  %vm875_vm4 = vcmask 1046534  }
  0x65   :  { %vm754_vm11 = vmand %vm752_vm8, %vm753_vm9  ;;  %vm877_vm5 = vcmask 1047559  }
  0x68   :  { %1054 = vmatmul.mubr.msk.bf16.gmra.mxu0 %vm156_vm0, %v1110_v6  ;;  %vm867_vm0 = vcmask 1042434  }
  0xd8   :  { %v215_v37 = vpop.f32.mrf.mxu0  ;;  %v1303_v38 = vpop.f32.mrf.mxu1 }
  0xda   :  { %v217_v39 = vpop.f32.mrf.mxu0  ;;  %v1305_v40 = vpop.f32.mrf.mxu1 }
  0xdb   :  { %v504_v46 = vrot.slane %v217_v39, 1  ;;  %v518_v25 = vrot.slane %v1305_v40, 1 }
  0xdc   :  { %v219_v42 = vpop.f32.mrf.mxu0  ;;  %v289_v43 = vpop.f32.mrf.mxu1 }
  0xde   :  { %v221_v44 = vpop.f32.mrf.mxu0  ;;  %v1310_v45 = vpop.f32.mrf.mxu1 }
  0xdf   :  { %v505_v47 = vrot.slane %v221_v44, 1  ;;  %v519_v48 = vrot.slane %v1310_v45, 1  ;;  %v751_v44 = vsel %vm1383_vm7, 13, %v747_v30 }
  0xe0   :  { %v225_v49 = vpop.f32.mrf.mxu0  ;;  %v1313_v50 = vpop.f32.mrf.mxu1 }
  0xe1   :  { %v537_v51 = vsel %vm522_vm2, %v504_v46, %v505_v47  ;;  %v538_v52 = vsel %vm522_vm2, %v519_v48, %v504_v46  ;;  %v555_v23 = vrot.slane %v1313_v50, 2  ;;  %v523_v0 = vsel %vm522_vm2, %v518_v25, %v519_v48 }
  0xe2   :  { %v1319_v53 = vadd.f32 %v537_v51, %v215_v37  ;;  %v1321_v54 = vadd.f32 %v538_v52, %v289_v43  ;;  %v227_v55 = vpop.f32.mrf.mxu0  ;;  %v1323_v56 = vpop.f32.mrf.mxu1 }
  0xe3   :  { %v506_v57 = vrot.slane %v227_v55, 1  ;;  %v604_v34 = vrot.slane %v1323_v56, 3 }
  0xe4   :  { %v1325_v58 = vpop.f32.mrf.mxu0  ;;  %v332_v59 = vpop.f32.mrf.mxu1 }
  0xe5   :  { %v536_v60 = vsel %vm522_vm2, %v505_v47, %v506_v57  ;;  %v556_v24 = vrot.slane %v332_v59, 2 }
  0xe6   :  { %v1329_v61 = vadd.f32 %v536_v60, %v219_v42  ;;  %v1331_v62 = vpop.f32.mrf.mxu0  ;;  %v1333_v63 = vpop.f32.mrf.mxu1  ;;  %v1427_v60 = vsel %vm754_vm11, 12, %v751_v44 }
  0xe7   :  { %v507_v1 = vrot.slane %v1331_v62, 1  ;;  %v586_v35 = vsel %vm571_vm6, %v555_v23, %v556_v24  ;;  %v605_v36 = vrot.slane %v1333_v63, 3  ;;  %v1430_v63 = vadd.s32 8, %v1307_v41 }
  0xe8   :  { %v1336_v2 = vpop.f32.mrf.mxu0  ;;  %v338_v3 = vpop.f32.mrf.mxu1  ;;  %vm1586_vm14 = vcmp.lt.s32.totalorder %v1307_v41, %v1427_v60 }
  0xe9   :  { %v535_v4 = vsel %vm522_vm2, %v506_v57, %v507_v1  ;;  %v557_v26 = vrot.slane %v338_v3, 2  ;;  %v635_v57 = vsel %vm620_vm10, %v604_v34, %v605_v36  ;;  %vm1561_vm13 = vcmp.lt.s32.totalorder %v1430_v63, %v1427_v60 }
  0xea   :  { %v541_v5 = vadd.f32 %v535_v4, %v225_v49  ;;  %v1342_v6 = vpop.f32.mrf.mxu0  ;;  %v1344_v7 = vpop.f32.mrf.mxu1  ;;  %v588_v49 = vadd.f32 %v586_v35, %v1319_v53  ;;  %v1433_v53 = vadd.f32 %v523_v0, %v1303_v38 }
  0xeb   :  { %v585_v37 = vsel %vm571_vm6, %v556_v24, %v557_v26  ;;  %v508_v39 = vrot.slane %v1342_v6, 1  ;;  %v606_v45 = vrot.slane %v1344_v7, 3 }
  0xec   :  { %v1346_v8 = vpop.f32.mrf.mxu0  ;;  %v1348_v9 = vpop.f32.mrf.mxu1  ;;  %v589_v3 = vadd.f32 %v585_v37, %v1329_v61  ;;  %v1451_v62 = vadd.f32 %v635_v57, %v588_v49 }
  0xed   :  { %v558_v29 = vrot.slane %v1348_v9, 2  ;;  %v534_v4 = vsel %vm522_vm2, %v507_v1, %v508_v39 }
  0xee   :  { %v1350_v10 = vpop.f32.mrf.mxu0  ;;  %v1352_v11 = vpop.f32.mrf.mxu1  ;;  %v542_v24 = vadd.f32 %v534_v4, %v1325_v58 }
  0xef   :  { %v584_v46 = vsel %vm571_vm6, %v557_v26, %v558_v29  ;;  %v509_v47 = vrot.slane %v1350_v10, 1  ;;  %v607_v48 = vrot.slane %v1352_v11, 3  ;;  %v634_v10 = vsel %vm620_vm10, %v605_v36, %v606_v45 }
  0xf0   :  { %v1354_v12 = vpop.f32.mrf.mxu0  ;;  %v1356_v13 = vpop.f32.mrf.mxu1  ;;  %v590_v6 = vadd.f32 %v584_v46, %v541_v5  ;;  %v1464_v31 = vadd.f32 %v634_v10, %v589_v3 }
  0xf1   :  { %v559_v51 = vrot.slane %v1356_v13, 2  ;;  %v533_v11 = vsel %vm522_vm2, %v508_v39, %v509_v47  ;;  %v633_v38 = vsel %vm620_vm10, %v606_v45, %v607_v48 }
  0xf2   :  { %v1358_v14 = vpop.f32.mrf.mxu0  ;;  %v1360_v15 = vpop.f32.mrf.mxu1  ;;  %v1467_v35 = vadd.f32 %v633_v38, %v590_v6 }
  0xf3   :  { %v510_v59 = vrot.slane %v1358_v14, 1  ;;  %v583_v1 = vsel %vm571_vm6, %v558_v29, %v559_v51  ;;  %v608_v5 = vrot.slane %v1360_v15, 3  ;;  %v543_v29 = vadd.f32 %v533_v11, %v1336_v2 }
  0xf4   :  { %v1362_v16 = vpop.f32.mrf.mxu0  ;;  %v1364_v17 = vpop.f32.mrf.mxu1  ;;  %v591_v58 = vadd.f32 %v583_v1, %v542_v24 }
  0xf5   :  { %v560_v61 = vrot.slane %v1364_v17, 2  ;;  %v532_v26 = vsel %vm522_vm2, %v509_v47, %v510_v59  ;;  %v632_v2 = vsel %vm620_vm10, %v607_v48, %v608_v5 }
  0xf6   :  { %v1366_v19 = vpop.f32.mrf.mxu0  ;;  %v1368_v20 = vpop.f32.mrf.mxu1  ;;  %v544_v37 = vadd.f32 %v532_v26, %v1346_v8 }
  0xf7   :  { %v511_v13 = vrot.slane %v1366_v19, 1  ;;  %v609_v15 = vrot.slane %v1368_v20, 3  ;;  %v582_v0 = vsel %vm571_vm6, %v559_v51, %v560_v61 }
  0xf8   :  { %v1370_v21 = vpop.f32.mrf.mxu0  ;;  %v1372_v22 = vpop.f32.mrf.mxu1  ;;  %v592_v47 = vadd.f32 %v582_v0, %v543_v29 }
  0xf9   :  { %v561_v30 = vrot.slane %v1372_v22, 2  ;;  %v531_v20 = vsel %vm522_vm2, %v510_v59, %v511_v13  ;;  %v631_v48 = vsel %vm620_vm10, %v608_v5, %v609_v15 }
  0xfa   :  { %v1377_v27 = vpop.f32.mrf.mxu0  ;;  %v1379_v28 = vpop.f32.mrf.mxu1  ;;  %v545_v59 = vadd.f32 %v531_v20, %v1354_v12 }
  0xfb   :  { %v512_v17 = vrot.slane %v1377_v27, 1  ;;  %v581_v46 = vsel %vm571_vm6, %v560_v61, %v561_v30  ;;  %v610_v49 = vrot.slane %v1379_v28, 3 }
  0xfc   :  { %v1387_v32 = vpop.f32.mrf.mxu0  ;;  %v1389_v33 = vpop.f32.mrf.mxu1 }
  0xfd   :  { %v562_v22 = vrot.slane %v1389_v33, 2  ;;  %v530_v33 = vsel %vm522_vm2, %v511_v13, %v512_v17  ;;  %v630_v5 = vsel %vm620_vm10, %v609_v15, %v610_v49 }
  0xfe   :  { %v1405_v42 = vpop.f32.mrf.mxu0  ;;  %v1407_v43 = vpop.f32.mrf.mxu1  ;;  %v546_v10 = vadd.f32 %v530_v33, %v1362_v16 }
  0xff   :  { %v513_v27 = vrot.slane %v1405_v42, 1  ;;  %v611_v51 = vrot.slane %v1407_v43, 3  ;;  %v580_v3 = vsel %vm571_vm6, %v561_v30, %v562_v22 }
 0x100   :  { %v1418_v52 = vpop.f32.mrf.mxu0  ;;  %v1420_v55 = vpop.f32.mrf.mxu1  ;;  %v594_v13 = vadd.f32 %v580_v3, %v545_v59 }
 0x101   :  { %v563_v39 = vrot.slane %v1420_v55, 2  ;;  %v529_v4 = vsel %vm522_vm2, %v512_v17, %v513_v27 }
 0x102   :  { %v1440_v7 = vpop.f32.mrf.mxu0  ;;  %v1442_v9 = vpop.f32.mrf.mxu1 }
 0x103   :  { %v514_v42 = vrot.slane %v1440_v7, 1  ;;  %v593_v7 = vadd.f32 %v581_v46, %v544_v37  ;;  %v579_v28 = vsel %vm571_vm6, %v562_v22, %v563_v39  ;;  %v612_v43 = vrot.slane %v1442_v9, 3 }
 0x104   :  { %v1457_v14 = vpop.f32.mrf.mxu0  ;;  %v372_v18 = vpop.f32.mrf.mxu1  ;;  %v547_v9 = vadd.f32 %v529_v4, %v1370_v21  ;;  %v595_v30 = vadd.f32 %v579_v28, %v546_v10  ;;  %v1529_v37 = vadd.f32 %v632_v2, %v591_v58  ;;  %v1535_v46 = vadd.f32 %v631_v48, %v592_v47 }
 0x105   :  { %v564_v8 = vrot.slane %v372_v18, 2  ;;  %v528_v12 = vsel %vm522_vm2, %v513_v27, %v514_v42  ;;  %v629_v18 = vsel %vm620_vm10, %v610_v49, %v611_v51  ;;  %v628_v15 = vsel %vm620_vm10, %v611_v51, %v612_v43 }
 0x106   :  { %v1470_v19 = vpop.f32.mrf.mxu0  ;;  %v1472_v36 = vpop.f32.mrf.mxu1  ;;  %v1537_v33 = vadd.f32 %v630_v5, %v593_v7  ;;  %v1545_v58 = vadd.f32 %v628_v15, %v595_v30 }
 0x107   :  { %v578_v61 = vsel %vm571_vm6, %v563_v39, %v564_v8  ;;  %v515_v1 = vrot.slane %v1470_v19, 1  ;;  %v613_v16 = vrot.slane %v1472_v36, 3  ;;  %v548_v36 = vadd.f32 %v528_v12, %v1387_v32 }
 0x108   :  { %v1484_v44 = vpop.f32.mrf.mxu0  ;;  %v378_v45 = vpop.f32.mrf.mxu1  ;;  %v596_v0 = vadd.f32 %v578_v61, %v547_v9 }
 0x109   :  { %v565_v6 = vrot.slane %v378_v45, 2  ;;  %v527_v20 = vsel %vm522_vm2, %v514_v42, %v515_v1  ;;  %v627_v39 = vsel %vm620_vm10, %v612_v43, %v613_v16 }
 0x10a   :  { %v1495_v55 = vpop.f32.mrf.mxu0  ;;  %v1497_v57 = vpop.f32.mrf.mxu1  ;;  %v549_v47 = vadd.f32 %v527_v20, %v1418_v52  ;;  %v1552_v48 = vadd.f32 %v627_v39, %v596_v0 }
 0x10b   :  { %v577_v17 = vsel %vm571_vm6, %v564_v8, %v565_v6  ;;  %v516_v29 = vrot.slane %v1495_v55, 1  ;;  %v614_v19 = vrot.slane %v1497_v57, 3  ;;  %v1543_v55 = vadd.f32 %v629_v18, %v594_v13 }
 0x10c   :  { %v1508_v11 = vpop.f32.mrf.mxu0  ;;  %v382_v38 = vpop.f32.mrf.mxu1  ;;  %v597_v32 = vadd.f32 %v577_v17, %v548_v36 }
 0x10d   :  { %v566_v21 = vrot.slane %v382_v38, 2  ;;  %v526_v2 = vsel %vm522_vm2, %v515_v1, %v516_v29  ;;  %v626_v42 = vsel %vm620_vm10, %v613_v16, %v614_v19 }
 0x10e   :  { %v281_v24 = vpop.f32.mrf.mxu0  ;;  %v384_v26 = vpop.f32.mrf.mxu1  ;;  %v550_v52 = vadd.f32 %v526_v2, %v1457_v14  ;;  %v1566_v12 = vadd.f32 %v626_v42, %v597_v32  ;;  %v1582_v14 = vld [vmem:[%s1745_s2] ss:$0 sm:$0xff] }
 0x10f   :  { %v517_v8 = vrot.slane %v281_v24, 1  ;;  %v576_v57 = vsel %vm571_vm6, %v565_v6, %v566_v21  ;;  %v615_v59 = vrot.slane %v384_v26, 3 }
 0x110   :  { %v388_v22 = vpop.f32.mrf.mxu1  ;;  %v1043_v27 = vpop.f32.mrf.mxu0  ;;  %v598_v9 = vadd.f32 %v576_v57, %v549_v47 }
 0x111   :  { %v567_v45 = vrot.slane %v388_v22, 2  ;;  %v655_v10 = vrot.slane %v1043_v27, 4  ;;  %v524_v6 = vsel %vm522_vm2, %v517_v8, %v518_v25  ;;  %v525_v61 = vsel %vm522_vm2, %v516_v29, %v517_v8 }
 0x112   :  { %v1539_v49 = vpop.f32.mrf.mxu1  ;;  %v1541_v51 = vpop.f32.mrf.mxu0  ;;  %v625_v18 = vsel %vm620_vm10, %v614_v19, %v615_v59  ;;  %v551_v29 = vadd.f32 %v525_v61, %v1484_v44  ;;  %v552_v19 = vadd.f32 %v524_v6, %v1508_v11  ;;  %vm871_vm2 = vcmask 1044484  }
 0x113   :  { %v575_v7 = vsel %vm571_vm6, %v566_v21, %v567_v45  ;;  %v616_v28 = vrot.slane %v1539_v49, 3  ;;  %v653_v63 = vrot.slane %v1541_v51, 4  ;;  %v1611_v8 = vadd.f32 %v625_v18, %v598_v9 }
 0x114   :  { %v392_v3 = vpop.f32.mrf.mxu1  ;;  %v1044_v4 = vpop.f32.mrf.mxu0  ;;  %v599_v24 = vadd.f32 %v575_v7, %v550_v52 }
 0x115   :  { %v656_v43 = vrot.slane %v1044_v4, 4  ;;  %v568_v5 = vrot.slane %v392_v3, 2  ;;  %v624_v36 = vsel %vm620_vm10, %v615_v59, %v616_v28 }
 0x116   :  { %v1574_v1 = vpop.f32.mrf.mxu1  ;;  %v444_v16 = vpop.f32.mrf.mxu0  ;;  %v1613_v49 = vadd.f32 %v624_v36, %v599_v24 }
 0x117   :  { %v682_v13 = vsel %vm669_vm12, %v655_v10, %v656_v43  ;;  %v654_v25 = vrot.slane %v444_v16, 4  ;;  %v574_v27 = vsel %vm571_vm6, %v567_v45, %v568_v5  ;;  %v617_v20 = vrot.slane %v1574_v1, 3 }
 0x118   :  { %v688_v26 = vadd.f32 %v682_v13, %v1467_v35  ;;  %v398_v30 = vpop.f32.mrf.mxu1  ;;  %v1047_v17 = vpop.f32.mrf.mxu0  ;;  %v1619_v59 = vadd.f32 %v574_v27, %v551_v29 }
 0x119   :  { %v683_v60 = vsel %vm669_vm12, %v654_v25, %v655_v10  ;;  %v684_v15 = vsel %vm669_vm12, %v653_v63, %v654_v25  ;;  %v569_v39 = vrot.slane %v398_v30, 2  ;;  %v659_v42 = vrot.slane %v1047_v17, 4 }
 0x11a   :  { %v711_v0 = vadd.f32 %v1582_v14, %v688_v26  ;;  %v686_v35 = vadd.f32 %v684_v15, %v1451_v62  ;;  %v687_v21 = vadd.f32 %v683_v60, %v1464_v31  ;;  %v1606_v44 = vpop.f32.mrf.mxu1  ;;  %v457_v22 = vpop.f32.mrf.mxu0  ;;  %v1625_v6 = vsel %vm620_vm10, %v616_v28, %v617_v20 }
 0x11b   :  { %v657_v32 = vrot.slane %v457_v22, 4  ;;  %v573_v61 = vsel %vm571_vm6, %v568_v5, %v569_v39  ;;  %v618_v29 = vrot.slane %v1606_v44, 3 }
 0x11c   :  { %v709_v11 = vadd.f32 %v1582_v14, %v686_v35  ;;  %v710_v62 = vadd.f32 %v1582_v14, %v687_v21  ;;  %v402_v2 = vpop.f32.mrf.mxu1  ;;  %v1048_v31 = vpop.f32.mrf.mxu0  ;;  %v727_v3 = vmax.f32 %v711_v0, 0.0  ;;  %v1646_v17 = vadd.f32 %v573_v61, %v552_v19 }
 0x11d   :  { %v681_v47 = vsel %vm669_vm12, %v656_v43, %v657_v32  ;;  %v570_v57 = vrot.slane %v402_v2, 2  ;;  %v660_v45 = vrot.slane %v1048_v31, 4 }
 0x11e   :  { %v725_v4 = vmax.f32 %v709_v11, 0.0  ;;  %v726_v7 = vmax.f32 %v710_v62, 0.0  ;;  %v404_v10 = vpop.f32.mrf.mxu1  ;;  %v460_v52 = vpop.f32.mrf.mxu0  ;;  %v689_v43 = vadd.f32 %v681_v47, %v1529_v37  ;;  %v764_v30 = vsel %vm1586_vm14, %v727_v3, 0.0 }
 0x11f   :  { %v678_v16 = vsel %vm669_vm12, %v659_v42, %v660_v45  ;;  %v572_v9 = vsel %vm571_vm6, %v569_v39, %v570_v57  ;;  %v587_v28 = vsel %vm571_vm6, %v570_v57, %v555_v23  ;;  %v619_v26 = vrot.slane %v404_v10, 3 }
 0x120   :  { %v762_v13 = vsel %vm1586_vm14, %v725_v4, 0.0  ;;  %v763_v25 = vsel %vm1561_vm13, %v726_v7, 0.0  ;;  %v1051_v5 = vpop.f32.mrf.mxu0  ;;  %v712_v37 = vadd.f32 %v1582_v14, %v689_v43  ;;  %v692_v24 = vadd.f32 %v678_v16, %v1543_v55 }
 0x121   :  { %v778_v18 = vmax.f32 %v762_v13, %v763_v25  ;;  %v658_v36 = vrot.slane %v460_v52, 4  ;;  %v602_v23 = vadd.f32 %v572_v9, %v1433_v53  ;;  %v603_v35 = vadd.f32 %v587_v28, %v1321_v54 }
 0x122   :  { %v473_v60 = vpop.f32.mrf.mxu0  ;;  %v728_v15 = vmax.f32 %v712_v37, 0.0  ;;  %v715_v0 = vadd.f32 %v1582_v14, %v692_v24  ;;  %v663_v19 = vrot.slane %v1051_v5, 4  ;;  %v621_v39 = vsel %vm620_vm10, %v618_v29, %v619_v26 }
 0x123   :  { %v779_v50 = vrot.slane %v778_v18, 4  ;;  %v679_v55 = vsel %vm669_vm12, %v658_v36, %v659_v42  ;;  %v680_v21 = vsel %vm669_vm12, %v657_v32, %v658_v36  ;;  %v636_v54 = vsel %vm620_vm10, %v619_v26, %v604_v34 }
 0x124   :  { %v1052_v22 = vpop.f32.mrf.mxu0  ;;  %v765_v44 = vsel %vm1561_vm13, %v728_v15, 0.0  ;;  %v690_v11 = vadd.f32 %v680_v21, %v1535_v46  ;;  %v691_v62 = vadd.f32 %v679_v55, %v1537_v33  ;;  %v661_v32 = vrot.slane %v473_v60, 4 }
 0x125   :  { %v780_v27 = vmax.f32 %v778_v18, %v779_v50  ;;  %v785_v53 = vmax.f32 %v764_v30, %v765_v44  ;;  %v731_v42 = vmax.f32 %v715_v0, 0.0  ;;  %v664_v47 = vrot.slane %v1052_v22, 4 }
 0x126   :  { %v476_v2 = vpop.f32.mrf.mxu0  ;;  %v713_v4 = vadd.f32 %v1582_v14, %v690_v11  ;;  %v714_v7 = vadd.f32 %v1582_v14, %v691_v62  ;;  %v677_v56 = vsel %vm669_vm12, %v660_v45, %v661_v32  ;;  %v622_v45 = vsel %vm620_vm10, %v617_v20, %v618_v29 }
 0x127   :  { %v781_v31 = vrot.slane %v780_v27, 2  ;;  %v662_v57 = vrot.slane %v476_v2, 4  ;;  %v786_v3 = vrot.slane %v785_v53, 4  ;;  %v693_v46 = vadd.f32 %v677_v56, %v1545_v58 }
 0x128   :  { %v1670_v34 = vpop.f32.mrf.mxu0  ;;  %v674_v33 = vsel %vm669_vm12, %v663_v19, %v664_v47  ;;  %v729_v43 = vmax.f32 %v713_v4, 0.0  ;;  %v730_v16 = vmax.f32 %v714_v7, 0.0  ;;  %v651_v24 = vadd.f32 %v621_v39, %v602_v23 }
 0x129   :  { %v782_v10 = vmax.f32 %v780_v27, %v781_v31  ;;  %v675_v52 = vsel %vm669_vm12, %v662_v57, %v663_v19  ;;  %v787_v61 = vmax.f32 %v785_v53, %v786_v3  ;;  %v696_v13 = vadd.f32 %v674_v33, %v1611_v8 }
 0x12a   :  { %v489_v25 = vpop.f32.mrf.mxu0  ;;  %v716_v58 = vadd.f32 %v1582_v14, %v693_v46  ;;  %v676_v9 = vsel %vm669_vm12, %v661_v32, %v662_v57  ;;  %v695_v28 = vadd.f32 %v675_v52, %v1566_v12  ;;  %v766_v37 = vsel %vm1586_vm14, %v729_v43, 0.0 }
 0x12b   :  { %v783_v5 = vrot.slane %v782_v10, 1  ;;  %v788_v18 = vrot.slane %v787_v61, 2  ;;  %v767_v8 = vsel %vm1561_vm13, %v730_v16, 0.0  ;;  %v652_v1 = vadd.f32 %v636_v54, %v603_v35 }
 0x12c   :  { %v732_v26 = vmax.f32 %v716_v58, 0.0  ;;  %v694_v20 = vadd.f32 %v676_v9, %v1552_v48  ;;  %v768_v29 = vsel %vm1586_vm14, %v731_v42, 0.0  ;;  %v719_v36 = vadd.f32 %v1582_v14, %v696_v13  ;;  %v1056_v60 = vpop.f32.mrf.mxu0 }
 0x12d   :  { %v789_v30 = vmax.f32 %v787_v61, %v788_v18  ;;  %v718_v12 = vadd.f32 %v1582_v14, %v695_v28  ;;  %v792_v50 = vmax.f32 %v766_v37, %v767_v8  ;;  %v665_v23 = vrot.slane %v489_v25, 4 }
 0x12e   :  { %v769_v15 = vsel %vm1561_vm13, %v732_v26, 0.0  ;;  %v717_v0 = vadd.f32 %v1582_v14, %v694_v20  ;;  %v784_v35 = vmax.f32 %v782_v10, %v783_v5  ;;  %v667_v22 = vrot.slane %v1670_v34, 4  ;;  %v492_v62 = vpop.f32.mrf.mxu0 }
 0x12f   :  { %v790_v55 = vrot.slane %v789_v30, 1  ;;  %v799_v21 = vmax.f32 %v768_v29, %v769_v15  ;;  %v734_v48 = vmax.f32 %v718_v12, 0.0  ;;  %v673_v27 = vsel %vm669_vm12, %v664_v47, %v665_v23 }
 0x130   :  { %v733_v19 = vmax.f32 %v717_v0, 0.0  ;;  %v668_v44 = vrot.slane %v1056_v60, 4  ;;  %v735_v54 = vmax.f32 %v719_v36, 0.0  ;;  %v697_v11 = vadd.f32 %v673_v27, %v1613_v49 }
 0x131   :  { %v791_v39 = vmax.f32 %v789_v30, %v790_v55  ;;  %v771_v53 = vsel %vm1561_vm13, %v734_v48, 0.0  ;;  %v793_v32 = vrot.slane %v792_v50, 4  ;;  %v800_v47 = vrot.slane %v799_v21, 4 }
 0x132   :  { %v770_v2 = vsel %vm1586_vm14, %v733_v19, 0.0  ;;  %v670_v31 = vsel %vm669_vm12, %v667_v22, %v668_v44  ;;  %v685_v42 = vsel %vm669_vm12, %v668_v44, %v653_v63  ;;  %v720_v3 = vadd.f32 %v1582_v14, %v697_v11 }
 0x133   :  { %v806_v57 = vmax.f32 %v770_v2, %v771_v53  ;;  %v700_v4 = vadd.f32 %v670_v31, %v651_v24  ;;  %v649_v49 = vadd.f32 %v1625_v6, %v1619_v59  ;;  %v701_v7 = vadd.f32 %v685_v42, %v652_v1 }
 0x134   :  { %v666_v56 = vrot.slane %v492_v62, 4  ;;  %v866_v34 = vsel %vm865_vm15, %v791_v39, %v784_v35  ;;  %v650_v10 = vadd.f32 %v622_v45, %v1646_v17  ;;  %v736_v33 = vmax.f32 %v720_v3, 0.0 }
 0x135   :  { %v807_v46 = vrot.slane %v806_v57, 4  ;;  %v723_v51 = vadd.f32 %v1582_v14, %v700_v4  ;;  %v794_v52 = vmax.f32 %v792_v50, %v793_v32  ;;  %v724_v63 = vadd.f32 %v1582_v14, %v701_v7 }
 0x136   :  { %v671_v61 = vsel %vm669_vm12, %v666_v56, %v667_v22  ;;  %v672_v43 = vsel %vm669_vm12, %v665_v23, %v666_v56  ;;  %v801_v59 = vmax.f32 %v799_v21, %v800_v47  ;;  %v772_v6 = vsel %vm1586_vm14, %v735_v54, 0.0 }
 0x137   :  { %v773_v17 = vsel %vm1561_vm13, %v736_v33, 0.0  ;;  %v739_v16 = vmax.f32 %v723_v51, 0.0  ;;  %v808_v13 = vmax.f32 %v806_v57, %v807_v46  ;;  %v740_v45 = vmax.f32 %v724_v63, 0.0 }
 0x138   :  { %v813_v25 = vmax.f32 %v772_v6, %v773_v17  ;;  %v698_v58 = vadd.f32 %v672_v43, %v649_v49  ;;  %v699_v28 = vadd.f32 %v671_v61, %v650_v10  ;;  %v795_v5 = vrot.slane %v794_v52, 2  ;;  %v1009_v10 = vld [vmem:[%s1747_s4] ss:$0 sm:$0xff] }
 0x139   :  { %v776_v9 = vsel %vm1586_vm14, %v739_v16, 0.0  ;;  %v777_v41 = vsel %vm1561_vm13, %v740_v45, 0.0  ;;  %v802_v8 = vrot.slane %v801_v59, 2  ;;  %v809_v26 = vrot.slane %v808_v13, 2 }
 0x13a   :  { %v814_v18 = vrot.slane %v813_v25, 4  ;;  %v721_v37 = vadd.f32 %v1582_v14, %v698_v58  ;;  %v827_v24 = vmax.f32 %v776_v9, %v777_v41  ;;  %v722_v1 = vadd.f32 %v1582_v14, %v699_v28 }
 0x13b   :  { %v796_v12 = vmax.f32 %v794_v52, %v795_v5  ;;  %v803_v15 = vmax.f32 %v801_v59, %v802_v8  ;;  %v810_v35 = vmax.f32 %v808_v13, %v809_v26 }
 0x13c   :  { %v815_v20 = vmax.f32 %v813_v25, %v814_v18  ;;  %v737_v30 = vmax.f32 %v721_v37, 0.0  ;;  %v828_v29 = vrot.slane %v827_v24, 4  ;;  %v738_v36 = vmax.f32 %v722_v1, 0.0 }
 0x13d   :  { %v797_v14 = vrot.slane %v796_v12, 1  ;;  %v804_v22 = vrot.slane %v803_v15, 1  ;;  %v811_v27 = vrot.slane %v810_v35, 1 }
 0x13e   :  { %v816_v60 = vrot.slane %v815_v20, 2  ;;  %v774_v50 = vsel %vm1586_vm14, %v737_v30, 0.0  ;;  %v829_v0 = vmax.f32 %v827_v24, %v828_v29  ;;  %v775_v23 = vsel %vm1561_vm13, %v738_v36, 0.0 }
 0x13f   :  { %v820_v55 = vmax.f32 %v774_v50, %v775_v23  ;;  %v798_v53 = vmax.f32 %v796_v12, %v797_v14  ;;  %v805_v40 = vmax.f32 %v803_v15, %v804_v22  ;;  %v812_v62 = vmax.f32 %v810_v35, %v811_v27 }
 0x140   :  { %v817_v21 = vmax.f32 %v815_v20, %v816_v60  ;;  %v830_v48 = vrot.slane %v829_v0, 2 }
 0x141   :  { %v821_v19 = vrot.slane %v820_v55, 4  ;;  %v868_v42 = vsel %vm867_vm0, %v798_v53, %v866_v34 }
 0x142   :  { %v818_v39 = vrot.slane %v817_v21, 1  ;;  %v831_v54 = vmax.f32 %v829_v0, %v830_v48  ;;  %v870_v47 = vsel %vm869_vm1, %v805_v40, %v868_v42 }
 0x143   :  { %v822_v44 = vmax.f32 %v820_v55, %v821_v19  ;;  %v872_v3 = vsel %vm871_vm2, %v812_v62, %v870_v47 }
 0x144   :  { %v819_v38 = vmax.f32 %v817_v21, %v818_v39  ;;  %v832_v2 = vrot.slane %v831_v54, 1 }
 0x145   :  { %v823_v11 = vrot.slane %v822_v44, 2 }
 0x146   :  { %v833_v4 = vmax.f32 %v831_v54, %v832_v2  ;;  %v874_v49 = vsel %vm873_vm3, %v819_v38, %v872_v3 }
 0x147   :  { %v824_v32 = vmax.f32 %v822_v44, %v823_v11 }
 0x149   :  { %v825_v31 = vrot.slane %v824_v32, 1 }
 0x14b   :  { %v826_v57 = vmax.f32 %v824_v32, %v825_v31 }
 0x14d   :  { %v876_v7 = vsel %vm875_vm4, %v826_v57, %v874_v49 }
 0x14e   :  { %v878_v56 = vsel %vm877_vm5, %v833_v4, %v876_v7 }
 0x14f   :  { %1090 = vmatmul.mubr.f32.vlgmr.msra.gmra.mxu1 %v878_v56 }
 0x20f   :  { %v946_v46 = vpop.f32.mrf.mxu1 }
 0x210   :  { %v947_v33 = vadd.f32 %v1009_v10, %v946_v46 }
 0x211   :  { %v1091_v34 = vpop.f32.mrf.mxu1 }
 0x212   :  { %950 = vst [vmem:[#allocation5] sm:$0xff] %v947_v33 }
 0x213   :  { %1156 = shalt.err (!%p1153_p9)
}
 0x214   :  { %960 = dma.vmem_to_hbm [thread:$0]  %s958_s11, 128, %s1748_s5, [#allocation4]  }
 0x215   :  { %1167 = dma.done.wait [#allocation4], 128  }
 0x216   :  { %1168 = vsyncadd [#allocation4], 4294967168 }
 0x217   :  { %964 = vsyncpa [#allocation3], 1 }
 0x218   :  { %965 = vsyncpa [#allocation4], 1 }

</bundles_post_ra>
